<compile_context>
chip_gen: v7x
topology: tpu7x:2x2x1
jax: 0.10.0
libtpu: 0.0.40
codegen_flags: <defaults>
</compile_context>

<pallas_src>
import functools

import jax
import jax.numpy as jnp
from jax.experimental import pallas as pl
from jax.experimental.pallas import tpu as pltpu

LN_EPS = 1e-5
BN_EPS = 1e-5


# ---------------------------------------------------------------------------
# Fused forward kernel (single invocation, whole batch resident in VMEM)
# ---------------------------------------------------------------------------
def _fused_forward_kernel(x_ref, adj_ref, pool_ref, ww_ref, lin_ref, vec_ref,
                          out_ref, *, L):
    """
    x_ref   : [B*N, H]      features (Fin zero-padded to H)
    adj_ref : [B*N, B*N]    block-diagonal adjacency (with self loops)
    pool_ref: [B, B*N]      mean-pooling matrix
    ww_ref  : [3+L, H, H]   0:W1(pad) 1:W2 2:beta*Ws@Wd^T 3..:folded conv weights
    lin_ref : [L+1, H, 128] lane-padded prediction weights (rows padded to H)
    vec_ref : [6+L, 128]    0:b1 1:ln_g 2:ln_b 3:b2 4:sum(lin_b) 5:beta*bo 6..:conv shifts
    out_ref : [(L+2)*B,128] rows [0:B]=scores, then pooled_0 .. pooled_L (lane padded)
    """
    x2 = x_ref[...]                                   # [BN, H]
    adj = adj_ref[...]                                # [BN, BN]
    pool = pool_ref[...]                              # [B, BN]
    H = x2.shape[-1]
    BN = adj.shape[-1]

    # ---- node MLP (eval): z = relu(LN(x W1 + b1)) W2 + b2
    # TODO(synk): MLP source not provided; standard Linear->LN->ReLU->Linear used.
    h = jnp.dot(x2, ww_ref[0], preferred_element_type=jnp.float32) + vec_ref[0:1, :H]
    mu = jnp.mean(h, axis=-1, keepdims=True)
    var = jnp.mean((h - mu) ** 2, axis=-1, keepdims=True)
    h = (h - mu) * jax.lax.rsqrt(var + LN_EPS) * vec_ref[1:2, :H] + vec_ref[2:3, :H]
    h = jnp.maximum(h, 0.0)
    z = jnp.dot(h, ww_ref[1], preferred_element_type=jnp.float32) + vec_ref[3:4, :H]

    # ---- edge mask: e = adj * sigmoid(z (beta Ws Wd^T) z^T + beta bo)
    # TODO(synk): EdgeMask2 source not provided; projected dot-product scorer used.
    zm = jnp.dot(z, ww_ref[2], preferred_element_type=jnp.float32)
    s = jax.lax.dot_general(zm, z, (((1,), (1,)), ((), ())),
                            preferred_element_type=jnp.float32)        # zm @ z^T
    e = adj * jax.nn.sigmoid(s + vec_ref[5:6, :BN])

    # ---- symmetric degree normalization (structural degree), computed ONCE
    # TODO(synk): confirm original GraphConv normalizes by structural (pre-mask) degree.
    deg = jnp.sum(adj, axis=-1, keepdims=True)
    norm = jax.lax.rsqrt(jnp.maximum(deg, 1.0))
    e_row = e * norm                                  # row-side D^-1/2 folded in once

    # ---- pooled(features) + first prediction linear (lane-dense accumulator)
    pooled = jnp.dot(pool, x2, preferred_element_type=jnp.float32)     # [B, H]
    scores = jnp.dot(pooled, lin_ref[0],
                     preferred_element_type=jnp.float32) + vec_ref[4:5, :]
    pooled_list = [pooled]

    # ---- GraphConv stack: h <- relu(D^-1/2 (A.mask) D^-1/2 h W' + shift')
    #      (conv bias + BatchNorm(eval) pre-folded into W' / shift' on host)
    h2 = x2
    for l in range(L):
        agg = jnp.dot(e_row, h2 * norm, preferred_element_type=jnp.float32)
        hh = jnp.dot(agg, ww_ref[3 + l], preferred_element_type=jnp.float32)
        h2 = jnp.maximum(hh + vec_ref[6 + l:7 + l, :H], 0.0)
        pooled = jnp.dot(pool, h2, preferred_element_type=jnp.float32) # [B, H]
        pooled_list.append(pooled)
        # identically shaped [B,128] matmuls issued back-to-back -> MRB accumulate on v7x
        scores = scores + jnp.dot(pooled, lin_ref[l + 1],
                                  preferred_element_type=jnp.float32)

    # ---- single lane-dense output slab: [(L+2)*B, 128]
    CPAD = out_ref.shape[-1]
    lane_pad = jnp.zeros((pooled_list[0].shape[0], CPAD - H), jnp.float32)
    rows = [scores] + [jnp.concatenate([p, lane_pad], axis=1) for p in pooled_list]
    out_ref[...] = jnp.concatenate(rows, axis=0)


# ---------------------------------------------------------------------------
# Wrapper: host-side folding / packing + a single pallas_call
# ---------------------------------------------------------------------------
def gcn_mlp2_forward(params, adj, features, beta=1.0):
    B, N, Fin = features.shape
    nm, em = params["node_mlp"], params["edge_mask"]
    H = nm["w1"].shape[1]
    C = params["linears"][0]["w"].shape[1]
    L = len(params["layers"])
    CPAD = 128
    BN = B * N
    f32 = jnp.float32
    assert Fin <= H, "input packing assumes in_feats <= n_hidden"
    beta = jnp.asarray(beta, f32)

    # ---- 2-D block-diagonal formulation (no batched matmuls / in-kernel reshapes)
    eyeB = jnp.eye(B, dtype=f32)
    adj_bd = (eyeB[:, None, :, None] * adj[:, :, None, :]).reshape(BN, BN)
    x2p = jnp.concatenate([features.reshape(BN, Fin),
                           jnp.zeros((BN, H - Fin), f32)], axis=1)      # [BN, H]
    pool_mat = jnp.kron(eyeB, jnp.full((1, N), 1.0 / N, f32))           # [B, BN]

    # ---- fold beta into the bilinear edge scorer / bias
    M = beta * jnp.dot(em["ws"], em["wd"].T)                            # [H, H]
    bo_beta = beta * em["bo"][0, 0]

    # ---- fold conv bias + BatchNorm(eval) into weight columns + one shift row
    w1p = jnp.concatenate([nm["w1"], jnp.zeros((H - Fin, H), f32)], axis=0)
    layer_ws, shift_rows = [], []
    for lp in params["layers"]:
        scale = lp["bn_g"] * jax.lax.rsqrt(lp["bn_v"] + BN_EPS)         # [1, H]
        shift = lp["b"] * scale + lp["bn_b"] - lp["bn_m"] * scale       # [1, H]
        w = lp["w"] * scale
        if w.shape[0] < H:
            w = jnp.concatenate([w, jnp.zeros((H - w.shape[0], H), f32)], axis=0)
        layer_ws.append(w)
        shift_rows.append(shift)
    ww = jnp.stack([w1p, nm["w2"], M] + layer_ws)                       # [3+L, H, H]

    # ---- prediction weights: rows padded to H, lanes padded to 128, stacked
    lin_list = []
    for lin in params["linears"]:
        w = lin["w"]
        w = jnp.concatenate([w, jnp.zeros((H - w.shape[0], C), f32)], axis=0)
        w = jnp.concatenate([w, jnp.zeros((H, CPAD - C), f32)], axis=1)
        lin_list.append(w)
    lin_stack = jnp.stack(lin_list)                                     # [L+1, H, 128]

    # ---- one [6+L, 128] vector slab for every [1,F] parameter
    def _row(v):
        return jnp.concatenate([v, jnp.zeros((1, CPAD - v.shape[-1]), f32)], axis=1)
    b_sum = sum(lin["b"] for lin in params["linears"])                  # [1, C]
    vec = jnp.concatenate(
        [_row(nm["b1"]), _row(nm["ln_g"]), _row(nm["ln_b"]), _row(nm["b2"]),
         _row(b_sum), bo_beta * jnp.ones((1, CPAD), f32)]
        + [_row(s) for s in shift_rows], axis=0)                        # [6+L, 128]

    vmem = pl.BlockSpec(memory_space=pltpu.MemorySpace.VMEM)
    out = pl.pallas_call(
        functools.partial(_fused_forward_kernel, L=L),
        out_shape=jax.ShapeDtypeStruct(((L + 2) * B, CPAD), f32),
        in_specs=[vmem] * 6,
        out_specs=vmem,
    )(x2p, adj_bd, pool_mat, ww, lin_stack, vec)

    scores = out[0:B, :C]                                               # un-pad slab
    pls = [out[B:2 * B, :Fin]] + [out[(l + 2) * B:(l + 3) * B, :H] for l in range(L)]
    return scores, pls


# ---------------------------------------------------------------------------
# Pure-JAX reference (unfused, original formulation) for correctness checking
# ---------------------------------------------------------------------------
def _reference_forward(params, adj, features, beta=1.0):
    hp = jax.lax.Precision.HIGHEST
    nm, em = params["node_mlp"], params["edge_mask"]
    x = features
    h = jnp.einsum('bnf,fh->bnh', x, nm["w1"], precision=hp) + nm["b1"]
    mu = h.mean(-1, keepdims=True)
    var = ((h - mu) ** 2).mean(-1, keepdims=True)
    h = (h - mu) / jnp.sqrt(var + LN_EPS) * nm["ln_g"] + nm["ln_b"]
    h = jnp.maximum(h, 0.0)
    z = jnp.einsum('bnh,hk->bnk', h, nm["w2"], precision=hp) + nm["b2"]

    s_src = jnp.einsum('bnh,he->bne', z, em["ws"], precision=hp)
    s_dst = jnp.einsum('bnh,he->bne', z, em["wd"], precision=hp)
    score = jnp.einsum('bne,bme->bnm', s_src, s_dst, precision=hp) + em["bo"][0, 0]
    e = adj * jax.nn.sigmoid(beta * score)

    deg = adj.sum(-1, keepdims=True)
    norm = 1.0 / jnp.sqrt(jnp.maximum(deg, 1.0))
    hcur = x
    hiddens = [x]
    for lp in params["layers"]:
        agg = jnp.einsum('bij,bjf->bif', e, hcur * norm, precision=hp) * norm
        hh = jnp.einsum('bnf,fh->bnh', agg, lp["w"], precision=hp) + lp["b"]
        hh = (hh - lp["bn_m"]) / jnp.sqrt(lp["bn_v"] + BN_EPS) * lp["bn_g"] + lp["bn_b"]
        hcur = jnp.maximum(hh, 0.0)
        hiddens.append(hcur)

    scores = 0.0
    pls = []
    for hh, lin in zip(hiddens, params["linears"]):
        pooled = hh.mean(axis=1)
        scores = scores + jnp.einsum('bf,fc->bc', pooled, lin["w"], precision=hp) + lin["b"]
        pls.append(pooled)
    return scores, pls


# ---------------------------------------------------------------------------
# Deterministic parameter construction (shapes follow the module __init__)
# ---------------------------------------------------------------------------
def _linear_init(key, fan_in, fan_out):
    kw, kb = jax.random.split(key)
    bound = 1.0 / float(fan_in) ** 0.5
    w = jax.random.uniform(kw, (fan_in, fan_out), jnp.float32, -bound, bound)
    b = jax.random.uniform(kb, (1, fan_out), jnp.float32, -bound, bound)
    return w, b


def init_params(key, in_feats, n_hidden, n_classes, n_layers, edge_dim):
    keys = jax.random.split(key, 16)
    w1, b1 = _linear_init(keys[0], in_feats, n_hidden)
    w2, b2 = _linear_init(keys[1], n_hidden, n_hidden)
    node_mlp_p = dict(w1=w1, b1=b1, w2=w2, b2=b2,
                      ln_g=jnp.ones((1, n_hidden), jnp.float32),
                      ln_b=jnp.zeros((1, n_hidden), jnp.float32))

    ws, _ = _linear_init(keys[2], n_hidden, edge_dim)
    wd, _ = _linear_init(keys[3], n_hidden, edge_dim)
    edge_mask_p = dict(ws=ws, wd=wd, bo=jnp.zeros((1, 1), jnp.float32))

    # GCN has (n_layers - 1) GraphConv layers + BatchNorms.
    layers = []
    dims = [in_feats] + [n_hidden] * (n_layers - 1)
    for i in range(n_layers - 1):
        w, b = _linear_init(keys[4 + i], dims[i], dims[i + 1])
        layers.append(dict(
            w=w, b=b,
            bn_g=jnp.ones((1, dims[i + 1]), jnp.float32),
            bn_b=jnp.zeros((1, dims[i + 1]), jnp.float32),
            bn_m=jnp.zeros((1, dims[i + 1]), jnp.float32),
            bn_v=jnp.ones((1, dims[i + 1]), jnp.float32)))

    # n_layers prediction linears (first takes raw features).
    lin_dims = [in_feats] + [n_hidden] * (n_layers - 1)
    linears = []
    for i in range(n_layers):
        w, b = _linear_init(keys[8 + i], lin_dims[i], n_classes)
        linears.append(dict(w=w, b=b))

    return dict(node_mlp=node_mlp_p, edge_mask=edge_mask_p,
                layers=layers, linears=linears)


if __name__ == "__main__":
    in_feats, n_hidden, n_classes, n_layers, edge_dim = 8, 32, 4, 3, 16
    B, N = 2, 16

    key = jax.random.PRNGKey(0)
    k_adj, k_feat, k_par = jax.random.split(key, 3)

    a = (jax.random.uniform(k_adj, (B, N, N)) < 0.3).astype(jnp.float32)
    adj = jnp.maximum(a, jnp.transpose(a, (0, 2, 1)))                  # undirected
    adj = jnp.maximum(adj, jnp.eye(N, dtype=jnp.float32)[None])        # self loops

    features = jax.random.normal(k_feat, (B, N, in_feats), jnp.float32)
    params = init_params(k_par, in_feats, n_hidden, n_classes, n_layers, edge_dim)

    scores, pls = gcn_mlp2_forward(params, adj, features, beta=1.0)
    jax.block_until_ready(scores)
    for p in pls:
        jax.block_until_ready(p)

    assert scores.shape == (B, n_classes)
    assert pls[0].shape == (B, in_feats)
    assert all(p.shape == (B, n_hidden) for p in pls[1:])
    assert bool(jnp.all(jnp.isfinite(scores)))

    # Validate the fused kernel against an unfused pure-JAX reference.
    ref_scores, ref_pls = _reference_forward(params, adj, features, beta=1.0)
    assert bool(jnp.allclose(scores, ref_scores, rtol=5e-2, atol=5e-3)), \
        "score mismatch vs pure-JAX reference"
    for p, rp in zip(pls, ref_pls):
        assert bool(jnp.allclose(p, rp, rtol=5e-2, atol=5e-3)), \
            "pooled mismatch vs pure-JAX reference"

    print("KERNEL_OK")
</pallas_src>

<mosaic_0001>
module attributes {stable_mosaic.version = 11 : i64} {
  func.func @_fused_forward_kernel(%arg0: memref<32x32xf32, #tpu.memory_space<vmem>>, %arg1: memref<32x32xf32, #tpu.memory_space<vmem>>, %arg2: memref<2x32xf32, #tpu.memory_space<vmem>>, %arg3: memref<5x32x32xf32, #tpu.memory_space<vmem>>, %arg4: memref<3x32x128xf32, #tpu.memory_space<vmem>>, %arg5: memref<8x128xf32, #tpu.memory_space<vmem>>, %arg6: memref<8x128xf32, #tpu.memory_space<vmem>>) attributes {dimension_semantics = [], scalar_prefetch = 0 : i64, scratch_operands = 0 : i64, tpu.core_type = #tpu.core_type<tc>} {
    %c0 = arith.constant 0 : index
    %c0_0 = arith.constant 0 : index
    %0 = vector.load %arg0[%c0, %c0_0] : memref<32x32xf32, #tpu.memory_space<vmem>>, vector<32x32xf32>
    %c0_1 = arith.constant 0 : index
    %c0_2 = arith.constant 0 : index
    %1 = vector.load %arg1[%c0_1, %c0_2] : memref<32x32xf32, #tpu.memory_space<vmem>>, vector<32x32xf32>
    %c0_3 = arith.constant 0 : index
    %c0_4 = arith.constant 0 : index
    %2 = vector.load %arg2[%c0_3, %c0_4] : memref<2x32xf32, #tpu.memory_space<vmem>>, vector<2x32xf32>
    %c0_5 = arith.constant 0 : index
    %c0_6 = arith.constant 0 : index
    %c0_7 = arith.constant 0 : index
    %3 = vector.load %arg3[%c0_5, %c0_6, %c0_7] : memref<5x32x32xf32, #tpu.memory_space<vmem>>, vector<1x32x32xf32>
    %4 = vector.shape_cast %3 : vector<1x32x32xf32> to vector<32x32xf32>
    %cst = arith.constant dense<0.000000e+00> : vector<32x32xf32>
    %5 = tpu.matmul %0, %4, %cst {dimension_numbers = #tpu.dot_dimension_numbers<[1], [0], [0], [1], [0, 0, 1, 1], [], []>} : vector<32x32xf32>, vector<32x32xf32>, vector<32x32xf32> -> vector<32x32xf32>
    %c0_8 = arith.constant 0 : index
    %c0_9 = arith.constant 0 : index
    %6 = vector.load %arg5[%c0_8, %c0_9] : memref<8x128xf32, #tpu.memory_space<vmem>>, vector<1x32xf32>
    %7 = vector.broadcast %6 : vector<1x32xf32> to vector<32x32xf32>
    %8 = arith.addf %5, %7 : vector<32x32xf32>
    %cst_10 = arith.constant dense<0.000000e+00> : vector<32xf32>
    %9 = vector.multi_reduction <add>, %8, %cst_10 [1] : vector<32x32xf32> to vector<32xf32>
    %10 = vector.shape_cast %9 : vector<32xf32> to vector<32x1xf32>
    %cst_11 = arith.constant 3.200000e+01 : f32
    %11 = vector.broadcast %cst_11 : f32 to vector<32x1xf32>
    %12 = arith.divf %10, %11 : vector<32x1xf32>
    %13 = vector.broadcast %12 : vector<32x1xf32> to vector<32x32xf32>
    %14 = arith.subf %8, %13 : vector<32x32xf32>
    %15 = arith.mulf %14, %14 : vector<32x32xf32>
    %cst_12 = arith.constant dense<0.000000e+00> : vector<32xf32>
    %16 = vector.multi_reduction <add>, %15, %cst_12 [1] : vector<32x32xf32> to vector<32xf32>
    %17 = vector.shape_cast %16 : vector<32xf32> to vector<32x1xf32>
    %cst_13 = arith.constant 3.200000e+01 : f32
    %18 = vector.broadcast %cst_13 : f32 to vector<32x1xf32>
    %19 = arith.divf %17, %18 : vector<32x1xf32>
    %20 = vector.broadcast %12 : vector<32x1xf32> to vector<32x32xf32>
    %21 = arith.subf %8, %20 : vector<32x32xf32>
    %cst_14 = arith.constant 9.99999974E-6 : f32
    %22 = vector.broadcast %cst_14 : f32 to vector<32x1xf32>
    %23 = arith.addf %19, %22 : vector<32x1xf32>
    %24 = math.rsqrt %23 : vector<32x1xf32>
    %25 = vector.broadcast %24 : vector<32x1xf32> to vector<32x32xf32>
    %26 = arith.mulf %21, %25 : vector<32x32xf32>
    %c1 = arith.constant 1 : index
    %c0_15 = arith.constant 0 : index
    %27 = vector.load %arg5[%c1, %c0_15] : memref<8x128xf32, #tpu.memory_space<vmem>>, vector<1x32xf32>
    %28 = vector.broadcast %27 : vector<1x32xf32> to vector<32x32xf32>
    %29 = arith.mulf %26, %28 : vector<32x32xf32>
    %c2 = arith.constant 2 : index
    %c0_16 = arith.constant 0 : index
    %30 = vector.load %arg5[%c2, %c0_16] : memref<8x128xf32, #tpu.memory_space<vmem>>, vector<1x32xf32>
    %31 = vector.broadcast %30 : vector<1x32xf32> to vector<32x32xf32>
    %32 = arith.addf %29, %31 : vector<32x32xf32>
    %cst_17 = arith.constant 0.000000e+00 : f32
    %33 = vector.broadcast %cst_17 : f32 to vector<32x32xf32>
    %34 = arith.maximumf %32, %33 : vector<32x32xf32>
    %c1_18 = arith.constant 1 : index
    %c0_19 = arith.constant 0 : index
    %c0_20 = arith.constant 0 : index
    %35 = vector.load %arg3[%c1_18, %c0_19, %c0_20] : memref<5x32x32xf32, #tpu.memory_space<vmem>>, vector<1x32x32xf32>
    %36 = vector.shape_cast %35 : vector<1x32x32xf32> to vector<32x32xf32>
    %cst_21 = arith.constant dense<0.000000e+00> : vector<32x32xf32>
    %37 = tpu.matmul %34, %36, %cst_21 {dimension_numbers = #tpu.dot_dimension_numbers<[1], [0], [0], [1], [0, 0, 1, 1], [], []>} : vector<32x32xf32>, vector<32x32xf32>, vector<32x32xf32> -> vector<32x32xf32>
    %c3 = arith.constant 3 : index
    %c0_22 = arith.constant 0 : index
    %38 = vector.load %arg5[%c3, %c0_22] : memref<8x128xf32, #tpu.memory_space<vmem>>, vector<1x32xf32>
    %39 = vector.broadcast %38 : vector<1x32xf32> to vector<32x32xf32>
    %40 = arith.addf %37, %39 : vector<32x32xf32>
    %c2_23 = arith.constant 2 : index
    %c0_24 = arith.constant 0 : index
    %c0_25 = arith.constant 0 : index
    %41 = vector.load %arg3[%c2_23, %c0_24, %c0_25] : memref<5x32x32xf32, #tpu.memory_space<vmem>>, vector<1x32x32xf32>
    %42 = vector.shape_cast %41 : vector<1x32x32xf32> to vector<32x32xf32>
    %cst_26 = arith.constant dense<0.000000e+00> : vector<32x32xf32>
    %43 = tpu.matmul %40, %42, %cst_26 {dimension_numbers = #tpu.dot_dimension_numbers<[1], [0], [0], [1], [0, 0, 1, 1], [], []>} : vector<32x32xf32>, vector<32x32xf32>, vector<32x32xf32> -> vector<32x32xf32>
    %cst_27 = arith.constant dense<0.000000e+00> : vector<32x32xf32>
    %44 = tpu.matmul %43, %40, %cst_27 {dimension_numbers = #tpu.dot_dimension_numbers<[1], [1], [0], [0], [0, 0, 1, 0], [], []>} : vector<32x32xf32>, vector<32x32xf32>, vector<32x32xf32> -> vector<32x32xf32>
    %c5 = arith.constant 5 : index
    %c0_28 = arith.constant 0 : index
    %45 = vector.load %arg5[%c5, %c0_28] : memref<8x128xf32, #tpu.memory_space<vmem>>, vector<1x32xf32>
    %46 = vector.broadcast %45 : vector<1x32xf32> to vector<32x32xf32>
    %47 = arith.addf %44, %46 : vector<32x32xf32>
    %48 = arith.negf %47 : vector<32x32xf32>
    %49 = math.exp %48 : vector<32x32xf32>
    %cst_29 = arith.constant 1.000000e+00 : f32
    %50 = vector.broadcast %cst_29 : f32 to vector<32x32xf32>
    %51 = arith.addf %50, %49 : vector<32x32xf32>
    %52 = arith.divf %50, %51 : vector<32x32xf32>
    %53 = arith.mulf %1, %52 : vector<32x32xf32>
    %cst_30 = arith.constant dense<0.000000e+00> : vector<32xf32>
    %54 = vector.multi_reduction <add>, %1, %cst_30 [1] : vector<32x32xf32> to vector<32xf32>
    %55 = vector.shape_cast %54 : vector<32xf32> to vector<32x1xf32>
    %cst_31 = arith.constant 1.000000e+00 : f32
    %56 = vector.broadcast %cst_31 : f32 to vector<32x1xf32>
    %57 = arith.maximumf %55, %56 : vector<32x1xf32>
    %58 = math.rsqrt %57 : vector<32x1xf32>
    %59 = vector.broadcast %58 : vector<32x1xf32> to vector<32x32xf32>
    %60 = arith.mulf %53, %59 : vector<32x32xf32>
    %cst_32 = arith.constant dense<0.000000e+00> : vector<2x32xf32>
    %61 = tpu.matmul %2, %0, %cst_32 {dimension_numbers = #tpu.dot_dimension_numbers<[1], [0], [0], [1], [0, 0, 1, 1], [], []>} : vector<2x32xf32>, vector<32x32xf32>, vector<2x32xf32> -> vector<2x32xf32>
    %c0_33 = arith.constant 0 : index
    %c0_34 = arith.constant 0 : index
    %c0_35 = arith.constant 0 : index
    %62 = vector.load %arg4[%c0_33, %c0_34, %c0_35] : memref<3x32x128xf32, #tpu.memory_space<vmem>>, vector<1x32x128xf32>
    %63 = vector.shape_cast %62 : vector<1x32x128xf32> to vector<32x128xf32>
    %cst_36 = arith.constant dense<0.000000e+00> : vector<2x128xf32>
    %64 = tpu.matmul %61, %63, %cst_36 {dimension_numbers = #tpu.dot_dimension_numbers<[1], [0], [0], [1], [0, 0, 1, 1], [], []>} : vector<2x32xf32>, vector<32x128xf32>, vector<2x128xf32> -> vector<2x128xf32>
    %c4 = arith.constant 4 : index
    %c0_37 = arith.constant 0 : index
    %65 = vector.load %arg5[%c4, %c0_37] : memref<8x128xf32, #tpu.memory_space<vmem>>, vector<1x128xf32>
    %66 = vector.broadcast %65 : vector<1x128xf32> to vector<2x128xf32>
    %67 = arith.addf %64, %66 : vector<2x128xf32>
    %68 = vector.broadcast %58 : vector<32x1xf32> to vector<32x32xf32>
    %69 = arith.mulf %0, %68 : vector<32x32xf32>
    %cst_38 = arith.constant dense<0.000000e+00> : vector<32x32xf32>
    %70 = tpu.matmul %60, %69, %cst_38 {dimension_numbers = #tpu.dot_dimension_numbers<[1], [0], [0], [1], [0, 0, 1, 1], [], []>} : vector<32x32xf32>, vector<32x32xf32>, vector<32x32xf32> -> vector<32x32xf32>
    %c3_39 = arith.constant 3 : index
    %c0_40 = arith.constant 0 : index
    %c0_41 = arith.constant 0 : index
    %71 = vector.load %arg3[%c3_39, %c0_40, %c0_41] : memref<5x32x32xf32, #tpu.memory_space<vmem>>, vector<1x32x32xf32>
    %72 = vector.shape_cast %71 : vector<1x32x32xf32> to vector<32x32xf32>
    %cst_42 = arith.constant dense<0.000000e+00> : vector<32x32xf32>
    %73 = tpu.matmul %70, %72, %cst_42 {dimension_numbers = #tpu.dot_dimension_numbers<[1], [0], [0], [1], [0, 0, 1, 1], [], []>} : vector<32x32xf32>, vector<32x32xf32>, vector<32x32xf32> -> vector<32x32xf32>
    %c6 = arith.constant 6 : index
    %c0_43 = arith.constant 0 : index
    %74 = vector.load %arg5[%c6, %c0_43] : memref<8x128xf32, #tpu.memory_space<vmem>>, vector<1x32xf32>
    %75 = vector.broadcast %74 : vector<1x32xf32> to vector<32x32xf32>
    %76 = arith.addf %73, %75 : vector<32x32xf32>
    %cst_44 = arith.constant 0.000000e+00 : f32
    %77 = vector.broadcast %cst_44 : f32 to vector<32x32xf32>
    %78 = arith.maximumf %76, %77 : vector<32x32xf32>
    %cst_45 = arith.constant dense<0.000000e+00> : vector<2x32xf32>
    %79 = tpu.matmul %2, %78, %cst_45 {dimension_numbers = #tpu.dot_dimension_numbers<[1], [0], [0], [1], [0, 0, 1, 1], [], []>} : vector<2x32xf32>, vector<32x32xf32>, vector<2x32xf32> -> vector<2x32xf32>
    %c1_46 = arith.constant 1 : index
    %c0_47 = arith.constant 0 : index
    %c0_48 = arith.constant 0 : index
    %80 = vector.load %arg4[%c1_46, %c0_47, %c0_48] : memref<3x32x128xf32, #tpu.memory_space<vmem>>, vector<1x32x128xf32>
    %81 = vector.shape_cast %80 : vector<1x32x128xf32> to vector<32x128xf32>
    %cst_49 = arith.constant dense<0.000000e+00> : vector<2x128xf32>
    %82 = tpu.matmul %79, %81, %cst_49 {dimension_numbers = #tpu.dot_dimension_numbers<[1], [0], [0], [1], [0, 0, 1, 1], [], []>} : vector<2x32xf32>, vector<32x128xf32>, vector<2x128xf32> -> vector<2x128xf32>
    %83 = arith.addf %67, %82 : vector<2x128xf32>
    %84 = vector.broadcast %58 : vector<32x1xf32> to vector<32x32xf32>
    %85 = arith.mulf %78, %84 : vector<32x32xf32>
    %cst_50 = arith.constant dense<0.000000e+00> : vector<32x32xf32>
    %86 = tpu.matmul %60, %85, %cst_50 {dimension_numbers = #tpu.dot_dimension_numbers<[1], [0], [0], [1], [0, 0, 1, 1], [], []>} : vector<32x32xf32>, vector<32x32xf32>, vector<32x32xf32> -> vector<32x32xf32>
    %c4_51 = arith.constant 4 : index
    %c0_52 = arith.constant 0 : index
    %c0_53 = arith.constant 0 : index
    %87 = vector.load %arg3[%c4_51, %c0_52, %c0_53] : memref<5x32x32xf32, #tpu.memory_space<vmem>>, vector<1x32x32xf32>
    %88 = vector.shape_cast %87 : vector<1x32x32xf32> to vector<32x32xf32>
    %cst_54 = arith.constant dense<0.000000e+00> : vector<32x32xf32>
    %89 = tpu.matmul %86, %88, %cst_54 {dimension_numbers = #tpu.dot_dimension_numbers<[1], [0], [0], [1], [0, 0, 1, 1], [], []>} : vector<32x32xf32>, vector<32x32xf32>, vector<32x32xf32> -> vector<32x32xf32>
    %c7 = arith.constant 7 : index
    %c0_55 = arith.constant 0 : index
    %90 = vector.load %arg5[%c7, %c0_55] : memref<8x128xf32, #tpu.memory_space<vmem>>, vector<1x32xf32>
    %91 = vector.broadcast %90 : vector<1x32xf32> to vector<32x32xf32>
    %92 = arith.addf %89, %91 : vector<32x32xf32>
    %cst_56 = arith.constant 0.000000e+00 : f32
    %93 = vector.broadcast %cst_56 : f32 to vector<32x32xf32>
    %94 = arith.maximumf %92, %93 : vector<32x32xf32>
    %cst_57 = arith.constant dense<0.000000e+00> : vector<2x32xf32>
    %95 = tpu.matmul %2, %94, %cst_57 {dimension_numbers = #tpu.dot_dimension_numbers<[1], [0], [0], [1], [0, 0, 1, 1], [], []>} : vector<2x32xf32>, vector<32x32xf32>, vector<2x32xf32> -> vector<2x32xf32>
    %c2_58 = arith.constant 2 : index
    %c0_59 = arith.constant 0 : index
    %c0_60 = arith.constant 0 : index
    %96 = vector.load %arg4[%c2_58, %c0_59, %c0_60] : memref<3x32x128xf32, #tpu.memory_space<vmem>>, vector<1x32x128xf32>
    %97 = vector.shape_cast %96 : vector<1x32x128xf32> to vector<32x128xf32>
    %cst_61 = arith.constant dense<0.000000e+00> : vector<2x128xf32>
    %98 = tpu.matmul %95, %97, %cst_61 {dimension_numbers = #tpu.dot_dimension_numbers<[1], [0], [0], [1], [0, 0, 1, 1], [], []>} : vector<2x32xf32>, vector<32x128xf32>, vector<2x128xf32> -> vector<2x128xf32>
    %99 = arith.addf %83, %98 : vector<2x128xf32>
    %cst_62 = arith.constant 0.000000e+00 : f32
    %100 = vector.broadcast %cst_62 : f32 to vector<2x96xf32>
    %101 = tpu.concatenate %61, %100 in 1 : vector<2x32xf32>, vector<2x96xf32> -> vector<2x128xf32>
    %102 = tpu.concatenate %79, %100 in 1 : vector<2x32xf32>, vector<2x96xf32> -> vector<2x128xf32>
    %103 = tpu.concatenate %95, %100 in 1 : vector<2x32xf32>, vector<2x96xf32> -> vector<2x128xf32>
    %104 = tpu.concatenate %99, %101, %102, %103 in 0 : vector<2x128xf32>, vector<2x128xf32>, vector<2x128xf32>, vector<2x128xf32> -> vector<8x128xf32>
    %c0_63 = arith.constant 0 : index
    %c0_64 = arith.constant 0 : index
    %105 = vector.load %arg6[%c0_63, %c0_64] : memref<8x128xf32, #tpu.memory_space<vmem>>, vector<8x128xf32>
    tpu.vector_store %arg6[%c0_63, %c0_64], %104 {strides = array<i32>} : memref<8x128xf32, #tpu.memory_space<vmem>>, vector<8x128xf32>,
    return
  }
}

</mosaic_0001>

<bundles_post_ra>
// kernel: tpu_custom_call.1
= control target key start
LH: loop header
LB: loop body
LE: loop exit
PB: predicated region body
PF: predicated region fallthrough
CT: control target
= control target key end

     0   :  { %11 = vsyncpa [#allocation3], 0  ;;  %s2447_s0 = inlined_call_operand.hbm [shape: f32[32,32], index: 0, kind: input, shape index: {}]   ;;  %s2448_s1 = inlined_call_operand.hbm [shape: f32[32,32], index: 1, kind: input, shape index: {}]   ;;  %s2449_s2 = inlined_call_operand.vmem [shape: f32[2,32], index: 2, kind: input, shape index: {}]   ;;  %s2450_s3 = inlined_call_operand.hbm [shape: f32[5,32,32], index: 3, kind: input, shape index: {}]   ;;  %s2451_s4 = inlined_call_operand.hbm [shape: f32[3,32,128], index: 4, kind: input, shape index: {}]   ;;  %s2452_s5 = inlined_call_operand.vmem [shape: f32[8,128], index: 5, kind: input, shape index: {}]   ;;  %s2453_s6 = inlined_call_operand.hbm [shape: f32[8,128], index: 6, kind: output, shape index: {}]  }
   0x1   :  { %12 = vsyncpa [#allocation6], 0 }
   0x2   :  { %13 = vsyncpa [#allocation9], 0 }
   0x3   :  { %14 = vsyncpa [#allocation4], 0  ;;  %s2129_s21 = smov [#allocation5]   ;;  %s2130_s23 = smov [#allocation2]  }
   0x4   :  { %s32_s22 = sshll.u32 %s2129_s21, 4  ;;  %s20_s24 = sshll.u32 %s2130_s23, 4  ;;  %s33_s22 = int_to_ptr.vmem [resolvable:$true] %s32_s22  ;;  %s2174_s24 = int_to_ptr.vmem [resolvable:$true] %s20_s24 }
   0x5   :  { %s2011_s27 = scalar_lea.hbm %s2448_s1, 512 }
   0x6   :  { %p2012_p0 = scmp.ne.s32.totalorder %s2448_s1, %s2011_s27  ;;  %p2015_p1 = scmp.lt.u32.totalorder %s2011_s27, %s2448_s1 }
   0x8   :  { %p2017_p2 = pnand %p2015_p1, %p2012_p0 }
   0xa   :  { %2020 = shalt.err (!%p2017_p2)
}
   0xb   :  { %s2021_s8 = scalar_lea.vmem %s33_s22, 512  ;;  %p2026_p4 = scmp.lt.s32.totalorder %s33_s22, %s33_s22 }
   0xc   :  { %p2022_p3 = scmp.ne.s32.totalorder %s33_s22, %s2021_s8  ;;  %p2027_p5 = scmp.lt.s32.totalorder %s2021_s8, %s2021_s8 }
   0xe   :  { %p2028_p6 = por %p2027_p5, %p2026_p4 }
  0x10   :  { %p2029_p7 = pnand %p2028_p6, %p2022_p3 }
  0x12   :  { %2032 = shalt.err (!%p2029_p7)
}
  0x13   :  { %s2131_s9 = smov 128   ;;  %s2132_s10 = smov 8  }
  0x14   :  { %38 = dma.hbm_to_vmem [thread:$0]  %s2448_s1, 512, %s33_s22, [#allocation6], %s2131_s9, %s2131_s9, %s2132_s10  }
  0x15   :  { %s2033_s15 = scalar_lea.hbm %s2447_s0, 512 }
  0x16   :  { %p2034_p8 = scmp.ne.s32.totalorder %s2447_s0, %s2033_s15  ;;  %p2037_p9 = scmp.lt.u32.totalorder %s2033_s15, %s2447_s0 }
  0x18   :  { %p2039_p10 = pnand %p2037_p9, %p2034_p8 }
  0x1a   :  { %2042 = shalt.err (!%p2039_p10)
}
  0x1b   :  { %s2043_s20 = scalar_lea.vmem %s2174_s24, 512  ;;  %p2048_p12 = scmp.lt.s32.totalorder %s2174_s24, %s2174_s24 }
  0x1c   :  { %p2044_p11 = scmp.ne.s32.totalorder %s2174_s24, %s2043_s20  ;;  %p2049_p13 = scmp.lt.s32.totalorder %s2043_s20, %s2043_s20 }
  0x1e   :  { %p2050_p0 = por %p2049_p13, %p2048_p12 }
  0x20   :  { %p2051_p1 = pnand %p2050_p0, %p2044_p11 }
  0x22   :  { %2054 = shalt.err (!%p2051_p1)
}
  0x23   :  { %26 = dma.hbm_to_vmem [thread:$0]  %s2447_s0, 512, %s2174_s24, [#allocation3], %s2131_s9, %s2131_s9, %s2132_s10  }
  0x24   :  { %s2133_s22 = smov [#allocation7]   ;;  %s2134_s25 = smov [#allocation8]  }
  0x25   :  { %s46_s23 = sshll.u32 %s2133_s22, 4  ;;  %s58_s26 = sshll.u32 %s2134_s25, 4  ;;  %s47_s23 = int_to_ptr.vmem [resolvable:$true] %s46_s23  ;;  %s2211_s26 = int_to_ptr.vmem [resolvable:$true] %s58_s26 }
  0x26   :  { %s2055_s29 = scalar_lea.hbm %s2450_s3, 2560 }
  0x27   :  { %p2056_p2 = scmp.ne.s32.totalorder %s2450_s3, %s2055_s29  ;;  %p2059_p3 = scmp.lt.u32.totalorder %s2055_s29, %s2450_s3 }
  0x29   :  { %p2061_p4 = pnand %p2059_p3, %p2056_p2 }
  0x2b   :  { %2064 = shalt.err (!%p2061_p4)
}
  0x2c   :  { %s2065_s0 = scalar_lea.vmem %s47_s23, 2560  ;;  %p2070_p6 = scmp.lt.s32.totalorder %s47_s23, %s47_s23 }
  0x2d   :  { %p2066_p5 = scmp.ne.s32.totalorder %s47_s23, %s2065_s0  ;;  %p2071_p7 = scmp.lt.s32.totalorder %s2065_s0, %s2065_s0 }
  0x2f   :  { %p2072_p8 = por %p2071_p7, %p2070_p6 }
  0x31   :  { %p2073_p9 = pnand %p2072_p8, %p2066_p5 }
  0x33   :  { %2076 = shalt.err (!%p2073_p9)
}
  0x34   :  { %52 = dma.hbm_to_vmem [thread:$0]  %s2450_s3, 2560, %s47_s23, [#allocation6], %s2131_s9, %s2131_s9, %s2132_s10  }
  0x35   :  { %s2077_s15 = scalar_lea.hbm %s2451_s4, 1536 }
  0x36   :  { %p2078_p10 = scmp.ne.s32.totalorder %s2451_s4, %s2077_s15  ;;  %p2081_p11 = scmp.lt.u32.totalorder %s2077_s15, %s2451_s4 }
  0x38   :  { %p2083_p12 = pnand %p2081_p11, %p2078_p10 }
  0x3a   :  { %2086 = shalt.err (!%p2083_p12)
}
  0x3b   :  { %s2087_s20 = scalar_lea.vmem %s2211_s26, 1536  ;;  %p2092_p0 = scmp.lt.s32.totalorder %s2211_s26, %s2211_s26 }
  0x3c   :  { %p2088_p13 = scmp.ne.s32.totalorder %s2211_s26, %s2087_s20  ;;  %p2093_p1 = scmp.lt.s32.totalorder %s2087_s20, %s2087_s20 }
  0x3e   :  { %p2094_p2 = por %p2093_p1, %p2092_p0 }
  0x40   :  { %p2095_p3 = pnand %p2094_p2, %p2088_p13 }
  0x42   :  { %2098 = shalt.err (!%p2095_p3)
}
  0x43   :  { %64 = dma.hbm_to_vmem [thread:$0]  %s2451_s4, 1536, %s2211_s26, [#allocation9], %s2131_s9, %s2131_s9, %s2132_s10  }
  0x44   :  { %2121 = dma.done.wait [#allocation3], 512  }
  0x45   :  { %2122 = vsyncadd [#allocation3], 4294966784 }
  0x46   :  { %2123 = dma.done.wait [#allocation6], 3072  }
  0x47   :  { %2124 = vsyncadd [#allocation6], 4294964224 }
  0x48   :  { %2125 = dma.done.wait [#allocation9], 1536  }
  0x49   :  { %2126 = vsyncadd [#allocation9], 4294965760  ;;  %vm97_vm0 = vcmask 261120   ;;  %v88_v0 = vld [vmem:[#allocation7] sm:$0xff]  ;;  %v89_v1 = vld [vmem:[#allocation7 + $0x8] sm:$0xff]  ;;  %vm2136_vm2 = vmmov 0  }
  0x4a   :  { %v90_v2 = vld [vmem:[#allocation7 + $0x10] sm:$0xff]  ;;  %v1860_v3 = vpack.c.bf16 %v89_v1, %v88_v0  ;;  %v91_v4 = vld [vmem:[#allocation7 + $0x18] sm:$0xff]  ;;  %v2248_v5 = vld [vmem:[#allocation2] sm:$0xff]  ;;  %vm1510_vm3 = vcmask 1041408   ;;  %vm1512_vm4 = vcmask 1043456   ;;  %s2138_s12 = smov [#allocation10]  }
  0x4b   :  { %v1864_v6 = vpack.c.bf16 %v91_v4, %v90_v2  ;;  %1690 = vmatprep.mubr.msk.f32.mxu0 %vm97_vm0, %v2248_v5  ;;  %v2252_v7 = vld [vmem:[#allocation2 + $0x8] sm:$0xff]  ;;  %v2254_v8 = vld [vmem:[#allocation2 + $0x10] sm:$0xff]  ;;  %v2260_v9 = vld [vmem:[#allocation2 + $0x18] sm:$0xff]  ;;  %s1523_s13 = sshll.u32 %s2138_s12, 4  ;;  %vm1514_vm5 = vcmask 1045504   ;;  %s1524_s13 = int_to_ptr.vmem [resolvable:$true] %s1523_s13 }
  0x4c   :  { %1861 = vmatprep.subr.bf16.mxu0 %v1860_v3  ;;  %v1534_v10 = vld [vmem:[%s2452_s5] ss:$0 sm:$0xff]  ;;  %v272_v44 = vld [vmem:[#allocation7 + $0x28] sm:$0xff]  ;;  %v273_v45 = vld [vmem:[#allocation7 + $0x30] sm:$0xff]  ;;  %p2104_p5 = scmp.lt.s32.totalorder %s1524_s13, %s1524_s13 }
  0x4d   :  { %1863 = vmatpush3.bf16.msra.mxu0 %v1860_v3  ;;  %v271_v43 = vld [vmem:[#allocation7 + $0x20] sm:$0xff]  ;;  %v274_v47 = vld [vmem:[#allocation7 + $0x38] sm:$0xff]  ;;  %v379_v50 = vld [vmem:[#allocation7 + $0x48] sm:$0xff] }
  0x4e   :  { %1865 = vmatprep.subr.bf16.mxu0 %v1864_v6  ;;  %v1868_v46 = vpack.c.bf16 %v272_v44, %v271_v43  ;;  %v1872_v48 = vpack.c.bf16 %v274_v47, %v273_v45  ;;  %v378_v49 = vld [vmem:[#allocation7 + $0x40] sm:$0xff]  ;;  %vm1885_vm1 = vmpackc.low %vm97_vm0, %vm97_vm0  ;;  %v2304_v45 = vld [vmem:[#allocation5 + $0x18] sm:$0xff] }
  0x4f   :  { %v1876_v51 = vpack.c.bf16 %v379_v50, %v378_v49  ;;  %v1539_v1 = vld [vmem:[%s2452_s5 + $0x1] ss:$0 sm:$0xff]  ;;  %v1540_v3 = vld [vmem:[%s2452_s5 + $0x2] ss:$0 sm:$0xff]  ;;  %v618_v47 = vsel %vm97_vm0, %v2304_v45, 0.0 }
  0x50   :  { %1869 = vmatprep.subr.bf16.mxu1 %v1868_v46 }
  0x51   :  { %1867 = vmatpush3.bf16.msra.mxu0 %v1864_v6  ;;  %1871 = vmatpush3.bf16.msra.mxu1 %v1868_v46 }
  0x52   :  { %1873 = vmatprep.subr.bf16.mxu1 %v1872_v48  ;;  %1877 = vmatprep.subr.bf16.mxu0 %v1876_v51 }
  0x54   :  { %1691 = vmatmul.mubr.msk.f32.vlgmr.msra.gmra.mrb[0].mxu0 %vm97_vm0, %v2252_v7 }
  0x55   :  { %1693 = vmatprep.mubr.msk.f32.mxu0 %vm97_vm0, %v2254_v8  ;;  %1875 = vmatpush3.bf16.msra.mxu1 %v1872_v48 }
  0x56   :  { %1879 = vmatpush3.bf16.msra.mxu0 %v1876_v51 }
  0x58   :  { %1694 = vmatmul.mubr.msk.f32.gmra.mrb[2].mxu0 %vm97_vm0, %v2260_v9 }
 0x127   :  { %v1692_v11 = vpop.f32.mrb[0].mxu0 }
 0x128   :  { %v176_v12 = vpop.f32.mrb[1].mxu0  ;;  %v182_v14 = vadd.f32 %v1692_v11, %v1534_v10 }
 0x129   :  { %v177_v13 = vadd.f32 %v1534_v10, %v176_v12 }
 0x12a   :  { %v198_v21 = vsel %vm97_vm0, %v182_v14, 0.0 }
 0x12b   :  { %v1695_v15 = vpop.f32.mrb[2].mxu0  ;;  %v195_v16 = vsel %vm97_vm0, %v177_v13, 0.0 }
 0x12c   :  { %v186_v17 = vpop.f32.mrb[3].mxu0  ;;  %196 = vadd.xlane.f32.xlu0 %v195_v16  ;;  %v192_v19 = vadd.f32 %v1695_v15, %v1534_v10 }
 0x12d   :  { %v187_v18 = vadd.f32 %v1534_v10, %v186_v17 }
 0x12e   :  { %v204_v22 = vsel %vm97_vm0, %v192_v19, 0.0 }
 0x12f   :  { %v201_v20 = vsel %vm97_vm0, %v187_v18, 0.0 }
 0x130   :  { %202 = vadd.xlane.f32.xlu1 %v201_v20  ;;  %199 = vadd.xlane.f32.xlu0 %v198_v21 }
 0x134   :  { %205 = vadd.xlane.f32.xlu1 %v204_v22 }
 0x1b9   :  { %v197_v23 = vpop.xlane.xlu0 %196 }
 0x1ba   :  { %v208_v24 = vmul.f32 0.03125, %v197_v23 }
 0x1bc   :  { %v212_v25 = vsub.f32 %v177_v13, %v208_v24 }
 0x1bd   :  { %v203_v26 = vpop.xlane.xlu1 %202  ;;  %v200_v27 = vpop.xlane.xlu0 %199 }
 0x1be   :  { %v210_v28 = vmul.f32 0.03125, %v203_v26  ;;  %v209_v29 = vmul.f32 0.03125, %v200_v27  ;;  %v216_v30 = vmul.f32 %v212_v25, %v212_v25  ;;  %v380_v26 = vld [vmem:[#allocation7 + $0x50] sm:$0xff]  ;;  %v381_v27 = vld [vmem:[#allocation7 + $0x58] sm:$0xff] }
 0x1c0   :  { %v214_v31 = vsub.f32 %v187_v18, %v210_v28  ;;  %v213_v32 = vsub.f32 %v182_v14, %v209_v29  ;;  %v220_v33 = vsel %vm97_vm0, %v216_v30, 0.0  ;;  %v1880_v28 = vpack.c.bf16 %v381_v27, %v380_v26  ;;  %v1541_v29 = vld [vmem:[%s2452_s5 + $0x3] ss:$0 sm:$0xff] }
 0x1c1   :  { %v206_v34 = vpop.xlane.xlu1 %205  ;;  %221 = vadd.xlane.f32.xlu0 %v220_v33 }
 0x1c2   :  { %v211_v35 = vmul.f32 0.03125, %v206_v34  ;;  %v218_v36 = vmul.f32 %v214_v31, %v214_v31  ;;  %v217_v37 = vmul.f32 %v213_v32, %v213_v32  ;;  %1881 = vmatprep.subr.bf16.mxu0 %v1880_v28 }
 0x1c3   :  { %1883 = vmatpush3.bf16.msra.mxu0 %v1880_v28 }
 0x1c4   :  { %v215_v38 = vsub.f32 %v192_v19, %v211_v35  ;;  %v226_v39 = vsel %vm97_vm0, %v218_v36, 0.0  ;;  %v223_v40 = vsel %vm97_vm0, %v217_v37, 0.0 }
 0x1c5   :  { %227 = vadd.xlane.f32.xlu0 %v226_v39  ;;  %224 = vadd.xlane.f32.xlu1 %v223_v40  ;;  %v2294_v40 = vld [vmem:[#allocation5] sm:$0xff] }
 0x1c6   :  { %v219_v41 = vmul.f32 %v215_v38, %v215_v38  ;;  %v609_v43 = vsel %vm97_vm0, %v2294_v40, 0.0 }
 0x1c8   :  { %v229_v42 = vsel %vm97_vm0, %v219_v41, 0.0  ;;  %v2296_v41 = vld [vmem:[#allocation5 + $0x8] sm:$0xff] }
 0x1c9   :  { %230 = vadd.xlane.f32.xlu1 %v229_v42  ;;  %v2298_v42 = vld [vmem:[#allocation5 + $0x10] sm:$0xff]  ;;  %v612_v44 = vsel %vm97_vm0, %v2296_v41, 0.0  ;;  %610 = vadd.xlane.f32.xlu0 %v609_v43 }
 0x1ca   :  { %v615_v46 = vsel %vm97_vm0, %v2298_v42, 0.0 }
 0x1cd   :  { %613 = vadd.xlane.f32.xlu1 %v612_v44  ;;  %616 = vadd.xlane.f32.xlu0 %v615_v46 }
 0x1d1   :  { %619 = vadd.xlane.f32.xlu1 %v618_v47 }
 0x24e   :  { %v222_v52 = vpop.xlane.xlu0 %221 }
 0x24f   :  { %v232_v53 = vmul.f32 0.03125, %v222_v52 }
 0x251   :  { %v236_v54 = vadd.f32 1e-05, %v232_v53 }
 0x252   :  { %v225_v55 = vpop.xlane.xlu1 %224  ;;  %v228_v56 = vpop.xlane.xlu0 %227 }
 0x253   :  { %1979 = vrsqrt.f32 %v236_v54  ;;  %v233_v57 = vmul.f32 0.03125, %v225_v55  ;;  %v234_v58 = vmul.f32 0.03125, %v228_v56 }
 0x255   :  { %v237_v59 = vadd.f32 1e-05, %v233_v57  ;;  %v238_v60 = vadd.f32 1e-05, %v234_v58 }
 0x256   :  { %v231_v61 = vpop.xlane.xlu1 %230  ;;  %v611_v53 = vpop.xlane.xlu0 %610 }
 0x257   :  { %1981 = vrsqrt.f32 %v237_v59  ;;  %v235_v62 = vmul.f32 0.03125, %v231_v61  ;;  %v621_v55 = vmax.f32 %v611_v53, 1.0 }
 0x258   :  { %1983 = vrsqrt.f32 %v238_v60  ;;  %v1897_v60 = vpack.c.bf16 %v2252_v7, %v2248_v5 }
 0x259   :  { %v239_v63 = vadd.f32 1e-05, %v235_v62  ;;  %v2135_v62 = vmov 0.0|0.0  }
 0x25a   :  { %v614_v52 = vpop.xlane.xlu1 %613  ;;  %v617_v57 = vpop.xlane.xlu0 %616  ;;  %1896 = vmatprep.subr.bf16.mxu0 %v2135_v62 }
 0x25b   :  { %1985 = vrsqrt.f32 %v239_v63  ;;  %v622_v54 = vmax.f32 %v614_v52, 1.0  ;;  %v623_v59 = vmax.f32 %v617_v57, 1.0 }
 0x25d   :  { %v1980_v0 = vpop.eup %1979  ;;  %1987 = vrsqrt.f32 %v622_v54 }
 0x25e   :  { %v244_v2 = vmul.f32 %v1980_v0, %v212_v25  ;;  %1989 = vrsqrt.f32 %v621_v55  ;;  %v620_v56 = vpop.xlane.xlu1 %619  ;;  %v1900_v0 = vpack.c.bf16 %v2260_v9, %v2254_v8 }
 0x25f   :  { %v624_v58 = vmax.f32 %v620_v56, 1.0 }
 0x260   :  { %v253_v4 = vmul.f32 %v1539_v1, %v244_v2 }
 0x261   :  { %v1982_v6 = vpop.eup %1981  ;;  %1991 = vrsqrt.f32 %v624_v58 }
 0x262   :  { %v1984_v10 = vpop.eup %1983  ;;  %v262_v11 = vadd.f32 %v1540_v3, %v253_v4  ;;  %v245_v12 = vmul.f32 %v1982_v6, %v213_v32  ;;  %1993 = vrsqrt.f32 %v623_v59 }
 0x263   :  { %v246_v13 = vmul.f32 %v1984_v10, %v214_v31 }
 0x264   :  { %v266_v14 = vmax.f32 %v262_v11, 0.0  ;;  %v254_v15 = vmul.f32 %v1539_v1, %v245_v12  ;;  %v707_v12 = vld [vmem:[#allocation8 + $0x8] sm:$0xff] }
 0x265   :  { %v1986_v16 = vpop.eup %1985  ;;  %v255_v17 = vmul.f32 %v1539_v1, %v246_v13  ;;  %v708_v13 = vld [vmem:[#allocation8 + $0x10] sm:$0xff] }
 0x266   :  { %1704 = vmatprep.mubr.msk.f32.mxu1 %vm97_vm0, %v266_v14  ;;  %v263_v18 = vadd.f32 %v1540_v3, %v254_v15  ;;  %v247_v19 = vmul.f32 %v1986_v16, %v215_v38  ;;  %v709_v15 = vld [vmem:[#allocation8 + $0x18] sm:$0xff] }
 0x267   :  { %v264_v20 = vadd.f32 %v1540_v3, %v255_v17  ;;  %v2316_v61 = vpop.eup %1987  ;;  %v1906_v16 = vpack.c.bf16 %v709_v15, %v708_v13  ;;  %v890_v17 = vld [vmem:[#allocation7 + $0x60] sm:$0xff] }
 0x268   :  { %v267_v21 = vmax.f32 %v263_v18, 0.0  ;;  %v256_v22 = vmul.f32 %v1539_v1, %v247_v19  ;;  %v2319_v63 = vpop.eup %1989  ;;  %v789_v1 = vmul.f32 %v2316_v61, %v2252_v7  ;;  %v2137_v7 = vmov 0.0   ;;  %v891_v18 = vld [vmem:[#allocation7 + $0x68] sm:$0xff] }
 0x269   :  { %v268_v23 = vmax.f32 %v264_v20, 0.0  ;;  %v788_v2 = vmul.f32 %v2319_v63, %v2248_v5  ;;  %v2342_v5 = vld [vmem:[%s2449_s2] sm:$0x3]  ;;  %v1916_v19 = vpack.c.bf16 %v891_v18, %v890_v17  ;;  %v1550_v20 = vld [vmem:[%s2452_s5 + $0x5] ss:$0 sm:$0xff] }
 0x26a   :  { %1705 = vmatmul.mubr.msk.f32.vlgmr.msra.gmra.mrb[0].mxu1 %vm97_vm0, %v267_v21  ;;  %v265_v24 = vadd.f32 %v1540_v3, %v256_v22 }
 0x26b   :  { %1707 = vmatprep.mubr.msk.f32.mxu1 %vm97_vm0, %v268_v23  ;;  %v2328_v3 = vpop.eup %1991  ;;  %v1908_v4 = vpack.c.bf16 %v789_v1, %v788_v2  ;;  %v1071_v1 = vld [vmem:[#allocation8 + $0x20] sm:$0xff]  ;;  %v1072_v2 = vld [vmem:[#allocation8 + $0x28] sm:$0xff] }
 0x26c   :  { %v269_v25 = vmax.f32 %v265_v24, 0.0  ;;  %v2330_v6 = vpop.eup %1993  ;;  %v791_v10 = vmul.f32 %v2328_v3, %v2260_v9 }
 0x26d   :  { %v790_v11 = vmul.f32 %v2330_v6, %v2254_v8  ;;  %v706_v8 = vld [vmem:[#allocation8] sm:$0xff] }
 0x26e   :  { %1708 = vmatmul.mubr.msk.f32.gmra.mrb[2].mxu1 %vm97_vm0, %v269_v25  ;;  %v1903_v14 = vpack.c.bf16 %v707_v12, %v706_v8  ;;  %v1570_v8 = vld [vmem:[%s2452_s5 + $0x6] ss:$0 sm:$0xff] }
 0x26f   :  { %v1912_v9 = vpack.c.bf16 %v791_v10, %v790_v11  ;;  %v1931_v10 = vpack.c.bf16 %v1072_v2, %v1071_v1  ;;  %v1074_v11 = vld [vmem:[#allocation8 + $0x38] sm:$0xff] }
 0x33d   :  { %v1706_v30 = vpop.f32.mrb[0].mxu1 }
 0x33e   :  { %v364_v31 = vadd.f32 %v1706_v30, %v1541_v29  ;;  %v358_v32 = vpop.f32.mrb[1].mxu1 }
 0x33f   :  { %v359_v33 = vadd.f32 %v1541_v29, %v358_v32 }
 0x341   :  { %v1884_v34 = vpack.c.bf16 %v364_v31, %v359_v33  ;;  %v1709_v35 = vpop.f32.mrb[2].mxu1  ;;  %1718 = vmatprep.mubr.msk.f32.mxu0 %vm97_vm0, %v359_v33 }
 0x342   :  { %v374_v36 = vadd.f32 %v1709_v35, %v1541_v29  ;;  %v368_v37 = vpop.f32.mrb[3].mxu1  ;;  %1719 = vmatmul.mubr.msk.f32.vlgmr.msra.gmra.mrb[4].mxu0 %vm97_vm0, %v364_v31 }
 0x343   :  { %v369_v38 = vadd.f32 %v1541_v29, %v368_v37  ;;  %1886 = vmatprep.subr.msk.bf16.mxu1 %vm1885_vm1, %v1884_v34  ;;  %1898 = vmatpush3.bf16.msra.mxu0 %v1897_v60 }
 0x344   :  { %1889 = vmatpush3.bf16.xpose.msk.msra.mxu1 %vm1885_vm1, %v1884_v34  ;;  %1899 = vmatprep.subr.bf16.mxu0 %v2135_v62 }
 0x345   :  { %v1890_v39 = vpack.c.bf16 %v374_v36, %v369_v38  ;;  %1721 = vmatprep.mubr.msk.f32.mxu0 %vm97_vm0, %v369_v38 }
 0x346   :  { %1722 = vmatmul.mubr.msk.f32.gmra.mrb[6].mxu0 %vm97_vm0, %v374_v36 }
 0x347   :  { %1892 = vmatprep.subr.msk.bf16.mxu1 %vm1885_vm1, %v1890_v39  ;;  %1901 = vmatpush3.bf16.msra.mxu0 %v1900_v0 }
 0x348   :  { %1902 = vmatprep.subr.bf16.mxu0 %v2135_v62  ;;  %1746 = vmatprep.mubr.msk.f32.mxu0 %vm2136_vm2, %v2137_v7 }
 0x34a   :  { %1747 = vmatmul.mubr.msk.f32.vlgmr.msra.gmra.mrb[8].mxu0 %vm97_vm0, %v2342_v5 }
 0x34b   :  { %1757 = vmatprep.mubr.msk.f32.mxu0 %vm2136_vm2, %v2137_v7  ;;  %1904 = vmatpush3.bf16.msra.mxu0 %v1903_v14 }
 0x34c   :  { %1895 = vmatpush3.bf16.xpose.msk.msra.mxu1 %vm1885_vm1, %v1890_v39  ;;  %1905 = vmatprep.subr.bf16.mxu0 %v2135_v62 }
 0x34d   :  { %1909 = vmatprep.subr.bf16.mxu1 %v1908_v4 }
 0x34f   :  { %1907 = vmatpush3.bf16.msra.mxu0 %v1906_v16 }
 0x350   :  { %1917 = vmatprep.subr.bf16.mxu0 %v1916_v19 }
 0x415   :  { %v1720_v48 = vpop.f32.mrb[4].mxu0 }
 0x416   :  { %v460_v49 = vpop.f32.mrb[5].mxu0 }
 0x417   :  { %1732 = vmatprep.mubr.msk.f32.mxu1 %vm97_vm0, %v460_v49 }
 0x418   :  { %1733 = vmatmul.mubr.msk.f32.vlgmr.msra.gmra.mrb[4].mxu1 %vm97_vm0, %v1720_v48 }
 0x419   :  { %v1723_v50 = vpop.f32.mrb[6].mxu0  ;;  %1911 = vmatpush3.bf16.msra.mxu1 %v1908_v4  ;;  %v1073_v4 = vld [vmem:[#allocation8 + $0x30] sm:$0xff] }
 0x41a   :  { %v470_v51 = vpop.f32.mrb[7].mxu0  ;;  %1913 = vmatprep.subr.bf16.mxu1 %v1912_v9 }
 0x41b   :  { %1735 = vmatprep.mubr.msk.f32.mxu1 %vm97_vm0, %v470_v51 }
 0x41c   :  { %1736 = vmatmul.mubr.msk.f32.gmra.mrb[6].mxu1 %vm97_vm0, %v1723_v50 }
 0x41d   :  { %1915 = vmatpush3.bf16.msra.mxu1 %v1912_v9  ;;  %v2379_v56 = vpop.f32.mrb[8].mxu0  ;;  %v1934_v9 = vpack.c.bf16 %v1074_v11, %v1073_v4  ;;  %v1564_v4 = vld [vmem:[%s2452_s5 + $0x4] ss:$0 sm:$0xff] }
 0x41e   :  { %1924 = vmatprep.subr.bf16.mxu1 %v2135_v62  ;;  %v1748_v57 = vpop.f32.mrb[9].mxu0  ;;  %1758 = vmatmul.mubr.msk.f32.vlgmr.msra.gmra.mrb[10].mxu0 %vm97_vm0, %v2379_v56  ;;  %v1498_v2 = vsel %vm97_vm0, %v2379_v56, 0.0 }
 0x41f   :  { %1919 = vmatpush3.bf16.msra.mxu0 %v1916_v19 }
 0x4eb   :  { %v1734_v21 = vpop.f32.mrb[4].mxu1 }
 0x4ec   :  { %v568_v22 = vadd.f32 %v1734_v21, %v1550_v20  ;;  %v562_v23 = vpop.f32.mrb[5].mxu1 }
 0x4ed   :  { %v563_v24 = vadd.f32 %v1550_v20, %v562_v23 }
 0x4ee   :  { %v1560_v25 = vmul.f32 -1.442695, %v568_v22 }
 0x4ef   :  { %v1559_v26 = vmul.f32 -1.442695, %v563_v24  ;;  %v1737_v27 = vpop.f32.mrb[6].mxu1 }
 0x4f0   :  { %1995 = vpow2.f32 %v1560_v25  ;;  %v578_v28 = vadd.f32 %v1737_v27, %v1550_v20  ;;  %v572_v29 = vpop.f32.mrb[7].mxu1 }
 0x4f1   :  { %1997 = vpow2.f32 %v1559_v26  ;;  %v573_v30 = vadd.f32 %v1550_v20, %v572_v29 }
 0x4f2   :  { %v1562_v31 = vmul.f32 -1.442695, %v578_v28 }
 0x4f3   :  { %v1561_v32 = vmul.f32 -1.442695, %v573_v30 }
 0x4f4   :  { %1999 = vpow2.f32 %v1562_v31 }
 0x4f5   :  { %2001 = vpow2.f32 %v1561_v32  ;;  %v1242_v32 = vld [vmem:[#allocation7 + $0x98] sm:$0xff] }
 0x4fa   :  { %v1996_v33 = vpop.eup %1995 }
 0x4fb   :  { %v1998_v34 = vpop.eup %1997  ;;  %v594_v35 = vadd.f32 1.0, %v1996_v33 }
 0x4fc   :  { %v593_v36 = vadd.f32 1.0, %v1998_v34 }
 0x4fd   :  { %2003 = vrcp.f32 %v594_v35 }
 0x4fe   :  { %v2000_v37 = vpop.eup %1999  ;;  %2005 = vrcp.f32 %v593_v36 }
 0x4ff   :  { %v2002_v38 = vpop.eup %2001  ;;  %v596_v39 = vadd.f32 1.0, %v2000_v37 }
 0x500   :  { %v595_v43 = vadd.f32 1.0, %v2002_v38 }
 0x501   :  { %2007 = vrcp.f32 %v596_v39 }
 0x502   :  { %2009 = vrcp.f32 %v595_v43  ;;  %v1420_v43 = vld [vmem:[#allocation8 + $0x40] sm:$0xff] }
 0x507   :  { %v2004_v44 = vpop.eup %2003 }
 0x508   :  { %v2006_v46 = vpop.eup %2005  ;;  %v606_v47 = vmul.f32 %v2004_v44, %v2296_v41  ;;  %v1421_v44 = vld [vmem:[#allocation8 + $0x48] sm:$0xff] }
 0x509   :  { %v605_v48 = vmul.f32 %v2006_v46, %v2294_v40  ;;  %v1422_v46 = vld [vmem:[#allocation8 + $0x50] sm:$0xff] }
 0x50a   :  { %v2359_v52 = vmul.f32 %v2316_v61, %v606_v47  ;;  %v1959_v47 = vpack.c.bf16 %v1421_v44, %v1420_v43 }
 0x50b   :  { %v2008_v49 = vpop.eup %2007  ;;  %v2356_v50 = vmul.f32 %v2319_v63, %v605_v48  ;;  %v1423_v48 = vld [vmem:[#allocation8 + $0x58] sm:$0xff] }
 0x50c   :  { %v2010_v51 = vpop.eup %2009  ;;  %v608_v53 = vmul.f32 %v2008_v49, %v2304_v45  ;;  %v892_v45 = vld [vmem:[#allocation7 + $0x70] sm:$0xff]  ;;  %v1962_v49 = vpack.c.bf16 %v1423_v48, %v1422_v46 }
 0x50d   :  { %1768 = vmatprep.mubr.msk.f32.mxu1 %vm97_vm0, %v2356_v50  ;;  %v607_v54 = vmul.f32 %v2010_v51, %v2298_v42  ;;  %v893_v42 = vld [vmem:[#allocation7 + $0x78] sm:$0xff] }
 0x50e   :  { %1769 = vmatmul.mubr.msk.f32.vlgmr.msra.gmra.mrb[8].mxu1 %vm97_vm0, %v2359_v52  ;;  %v2371_v41 = vmul.f32 %v2328_v3, %v608_v53  ;;  %v1920_v55 = vpack.c.bf16 %v893_v42, %v892_v45 }
 0x50f   :  { %v2368_v40 = vmul.f32 %v2330_v6, %v607_v54 }
 0x510   :  { %1921 = vmatprep.subr.bf16.mxu0 %v1920_v55 }
 0x511   :  { %1771 = vmatprep.mubr.msk.f32.mxu1 %vm97_vm0, %v2368_v40  ;;  %1923 = vmatpush3.bf16.msra.mxu0 %v1920_v55 }
 0x512   :  { %1772 = vmatmul.mubr.msk.f32.gmra.mrb[10].mxu1 %vm97_vm0, %v2371_v41  ;;  %1930 = vmatprep.subr.bf16.mxu0 %v2135_v62 }
 0x513   :  { %1796 = vmatprep.mubr.msk.f32.mxu1 %vm2136_vm2, %v2137_v7 }
 0x5e1   :  { %v1770_v58 = vpop.f32.mrb[8].mxu1 }
 0x5e2   :  { %v870_v59 = vpop.f32.mrb[9].mxu1 }
 0x5e3   :  { %1782 = vmatprep.mubr.msk.f32.mxu0 %vm97_vm0, %v870_v59 }
 0x5e4   :  { %1783 = vmatmul.mubr.msk.f32.vlgmr.msra.gmra.mrb[12].mxu0 %vm97_vm0, %v1770_v58 }
 0x5e5   :  { %v1773_v60 = vpop.f32.mrb[10].mxu1  ;;  %1932 = vmatpush3.bf16.msra.mxu0 %v1931_v10 }
 0x5e6   :  { %v880_v0 = vpop.f32.mrb[11].mxu1  ;;  %1933 = vmatprep.subr.bf16.mxu0 %v2135_v62 }
 0x5e7   :  { %1785 = vmatprep.mubr.msk.f32.mxu0 %vm97_vm0, %v880_v0 }
 0x5e8   :  { %1786 = vmatmul.mubr.msk.f32.gmra.mrb[14].mxu0 %vm97_vm0, %v1773_v60 }
 0x5e9   :  { %1807 = vmatprep.mubr.msk.f32.mxu0 %vm2136_vm2, %v2137_v7  ;;  %1935 = vmatpush3.bf16.msra.mxu0 %v1934_v9  ;;  %v1502_v9 = vrot.slane %v1498_v2, 6 }
 0x6b7   :  { %v1784_v12 = vpop.f32.mrb[12].mxu0 }
 0x6b8   :  { %v983_v13 = vadd.f32 %v1784_v12, %v1570_v8  ;;  %v977_v14 = vpop.f32.mrb[13].mxu0 }
 0x6b9   :  { %v978_v15 = vadd.f32 %v1570_v8, %v977_v14 }
 0x6ba   :  { %v997_v16 = vmax.f32 %v983_v13, 0.0 }
 0x6bb   :  { %v996_v17 = vmax.f32 %v978_v15, 0.0  ;;  %v1787_v18 = vpop.f32.mrb[14].mxu0 }
 0x6bc   :  { %v1150_v19 = vmul.f32 %v2316_v61, %v997_v16  ;;  %v993_v20 = vadd.f32 %v1787_v18, %v1570_v8  ;;  %v987_v21 = vpop.f32.mrb[15].mxu0  ;;  %v1239_v61 = vld [vmem:[#allocation7 + $0x80] sm:$0xff] }
 0x6bd   :  { %v1925_v22 = vpack.c.bf16 %v997_v16, %v996_v17  ;;  %v1149_v23 = vmul.f32 %v2319_v63, %v996_v17  ;;  %v988_v24 = vadd.f32 %v1570_v8, %v987_v21  ;;  %v1240_v63 = vld [vmem:[#allocation7 + $0x88] sm:$0xff] }
 0x6be   :  { %v999_v25 = vmax.f32 %v993_v20, 0.0 }
 0x6bf   :  { %v998_v26 = vmax.f32 %v988_v24, 0.0  ;;  %1926 = vmatpush3.bf16.msra.mxu1 %v1925_v22  ;;  %v1936_v27 = vpack.c.bf16 %v1150_v19, %v1149_v23 }
 0x6c0   :  { %v1152_v28 = vmul.f32 %v2328_v3, %v999_v25  ;;  %1927 = vmatprep.subr.bf16.mxu1 %v2135_v62  ;;  %v1944_v3 = vpack.c.bf16 %v1240_v63, %v1239_v61 }
 0x6c1   :  { %v1928_v29 = vpack.c.bf16 %v999_v25, %v998_v26  ;;  %v1151_v30 = vmul.f32 %v2330_v6, %v998_v26  ;;  %v1241_v6 = vld [vmem:[#allocation7 + $0x90] sm:$0xff] }
 0x6c2   :  { %1945 = vmatprep.subr.bf16.mxu0 %v1944_v3  ;;  %v1948_v33 = vpack.c.bf16 %v1242_v32, %v1241_v6 }
 0x6c3   :  { %1929 = vmatpush3.bf16.msra.mxu1 %v1928_v29  ;;  %v1940_v31 = vpack.c.bf16 %v1152_v28, %v1151_v30 }
 0x6c4   :  { %1937 = vmatprep.subr.bf16.mxu1 %v1936_v27 }
 0x6c6   :  { %1797 = vmatmul.mubr.msk.f32.vlgmr.msra.gmra.mrb[12].mxu1 %vm97_vm0, %v2342_v5 }
 0x6c7   :  { %1939 = vmatpush3.bf16.msra.mxu1 %v1936_v27  ;;  %1818 = vmatprep.mubr.msk.f32.mxu1 %vm97_vm0, %v2356_v50  ;;  %v1581_v50 = vld [vmem:[%s2452_s5 + $0x7] ss:$0 sm:$0xff]  ;;  %s2099_s5 = scalar_lea.vmem %s1524_s13, 128 }
 0x6c8   :  { %1941 = vmatprep.subr.bf16.mxu1 %v1940_v31  ;;  %p2100_p4 = scmp.ne.s32.totalorder %s1524_s13, %s2099_s5  ;;  %p2105_p6 = scmp.lt.s32.totalorder %s2099_s5, %s2099_s5 }
 0x6ca   :  { %p2106_p7 = por %p2105_p6, %p2104_p5 }
 0x6cb   :  { %1943 = vmatpush3.bf16.msra.mxu1 %v1940_v31 }
 0x6cc   :  { %1952 = vmatprep.subr.bf16.mxu1 %v2135_v62  ;;  %p2107_p8 = pnand %p2106_p7, %p2100_p4 }
 0x6ce   :  { %1819 = vmatmul.mubr.msk.f32.vlgmr.msra.gmra.mrb[14].mxu1 %vm97_vm0, %v2359_v52 }
 0x6cf   :  { %1821 = vmatprep.mubr.msk.f32.mxu1 %vm97_vm0, %v2368_v40 }
 0x6d2   :  { %1822 = vmatmul.mubr.msk.f32.gmra.mrb[16].mxu1 %vm97_vm0, %v2371_v41 }
 0x6d3   :  { %1846 = vmatprep.mubr.msk.f32.mxu1 %vm2136_vm2, %v2137_v7 }
 0x799   :  { %v1066_v34 = vpop.f32.mrb[12].mxu1 }
 0x79a   :  { %v1798_v35 = vpop.f32.mrb[13].mxu1  ;;  %1808 = vmatmul.mubr.msk.f32.vlgmr.msra.gmra.mrb[10].mxu0 %vm97_vm0, %v1066_v34  ;;  %v1499_v10 = vsel %vm97_vm0, %v1066_v34, 0.0 }
 0x79b   :  { %1947 = vmatpush3.bf16.msra.mxu0 %v1944_v3  ;;  %v1505_v12 = vrot.slane %v1499_v10, 4 }
 0x79c   :  { %1949 = vmatprep.subr.bf16.mxu0 %v1948_v33 }
 0x79f   :  { %1951 = vmatpush3.bf16.msra.mxu0 %v1948_v33 }
 0x7a0   :  { %1958 = vmatprep.subr.bf16.mxu0 %v2135_v62 }
 0x7a1   :  { %v1820_v36 = vpop.f32.mrb[14].mxu1 }
 0x7a2   :  { %v1219_v37 = vpop.f32.mrb[15].mxu1 }
 0x7a3   :  { %1832 = vmatprep.mubr.msk.f32.mxu0 %vm97_vm0, %v1219_v37 }
 0x7a4   :  { %1833 = vmatmul.mubr.msk.f32.vlgmr.msra.gmra.mrb[16].mxu0 %vm97_vm0, %v1820_v36 }
 0x7a5   :  { %v1823_v38 = vpop.f32.mrb[16].mxu1  ;;  %1960 = vmatpush3.bf16.msra.mxu0 %v1959_v47 }
 0x7a6   :  { %v1229_v39 = vpop.f32.mrb[17].mxu1  ;;  %1961 = vmatprep.subr.bf16.mxu0 %v2135_v62 }
 0x7a7   :  { %1835 = vmatprep.mubr.msk.f32.mxu0 %vm97_vm0, %v1229_v39 }
 0x7a8   :  { %1836 = vmatmul.mubr.msk.f32.gmra.mrb[18].mxu0 %vm97_vm0, %v1823_v38 }
 0x7a9   :  { %1857 = vmatprep.mubr.msk.f32.mxu0 %vm2136_vm2, %v2137_v7  ;;  %1963 = vmatpush3.bf16.msra.mxu0 %v1962_v49 }
 0x877   :  { %v1834_v51 = vpop.f32.mrb[16].mxu0 }
 0x878   :  { %v1332_v52 = vadd.f32 %v1834_v51, %v1581_v50  ;;  %v1326_v53 = vpop.f32.mrb[17].mxu0 }
 0x879   :  { %v1327_v54 = vadd.f32 %v1581_v50, %v1326_v53 }
 0x87a   :  { %v1346_v40 = vmax.f32 %v1332_v52, 0.0 }
 0x87b   :  { %v1345_v7 = vmax.f32 %v1327_v54, 0.0  ;;  %v1837_v41 = vpop.f32.mrb[18].mxu0 }
 0x87c   :  { %v1342_v45 = vadd.f32 %v1837_v41, %v1581_v50  ;;  %v1336_v42 = vpop.f32.mrb[19].mxu0 }
 0x87d   :  { %v1953_v55 = vpack.c.bf16 %v1346_v40, %v1345_v7  ;;  %v1337_v57 = vadd.f32 %v1581_v50, %v1336_v42 }
 0x87e   :  { %v1348_v58 = vmax.f32 %v1342_v45, 0.0 }
 0x87f   :  { %v1347_v59 = vmax.f32 %v1337_v57, 0.0  ;;  %1954 = vmatpush3.bf16.msra.mxu1 %v1953_v55 }
 0x880   :  { %1955 = vmatprep.subr.bf16.mxu1 %v2135_v62 }
 0x881   :  { %v1956_v60 = vpack.c.bf16 %v1348_v58, %v1347_v59 }
 0x883   :  { %1957 = vmatpush3.bf16.msra.mxu1 %v1956_v60 }
 0x886   :  { %1847 = vmatmul.mubr.msk.f32.vlgmr.msra.gmra.mrb[18].mxu1 %vm97_vm0, %v2342_v5 }
 0x959   :  { %v1415_v0 = vpop.f32.mrb[18].mxu1 }
 0x95a   :  { %v1848_v1 = vpop.f32.mrb[19].mxu1  ;;  %1858 = vmatmul.mubr.msk.f32.vlgmr.msra.gmra.mrb[10].mxu0 %vm97_vm0, %v1415_v0  ;;  %v1500_v62 = vsel %vm97_vm0, %v1415_v0, 0.0 }
 0x95b   :  { %v1508_v13 = vrot.slane %v1500_v62, 2 }
 0xa2d   :  { %v1493_v11 = vpop.f32.mrb[10].mxu0 }
 0xa2e   :  { %v1964_v8 = vadd.f32 %v1564_v4, %v1493_v11  ;;  %v1859_v5 = vpop.f32.mrb[11].mxu0 }
 0xa30   :  { %v1511_v56 = vsel %vm1510_vm3, %v1964_v8, %v1502_v9 }
 0xa31   :  { %v1513_v14 = vsel %vm1512_vm4, %v1511_v56, %v1505_v12 }
 0xa32   :  { %v1515_v15 = vsel %vm1514_vm5, %v1513_v14, %v1508_v13 }
 0xa33   :  { %1516 = vst [vmem:[#allocation10] sm:$0xff] %v1515_v15 }
 0xa34   :  { %2110 = shalt.err (!%p2107_p8)
}
 0xa35   :  { %s2111_s16 = scalar_lea.hbm %s2453_s6, 128 }
 0xa36   :  { %p2112_p9 = scmp.ne.s32.totalorder %s2453_s6, %s2111_s16  ;;  %p2115_p10 = scmp.lt.u32.totalorder %s2111_s16, %s2453_s6 }
 0xa38   :  { %p2117_p11 = pnand %p2115_p10, %p2112_p9 }
 0xa3a   :  { %2120 = shalt.err (!%p2117_p11)
}
 0xa3b   :  { %1526 = dma.vmem_to_hbm [thread:$0]  %s1524_s13, 128, %s2453_s6, [#allocation4]  }
 0xa3c   :  { %2127 = dma.done.wait [#allocation4], 128  }
 0xa3d   :  { %2128 = vsyncadd [#allocation4], 4294967168 }
 0xa3e   :  { %1530 = vsyncpa [#allocation3], 1 }
 0xa3f   :  { %1531 = vsyncpa [#allocation6], 1 }
 0xa40   :  { %1532 = vsyncpa [#allocation9], 1 }
 0xa41   :  { %1533 = vsyncpa [#allocation4], 1 }

</bundles_post_ra>
